<compile_context>
chip_gen: v7x
topology: tpu7x:2x2x1
jax: 0.10.0
libtpu: 0.0.40
codegen_flags: <defaults>
</compile_context>

<pallas_src>
import functools
import math

import jax
import jax.numpy as jnp
from jax.experimental import pallas as pl
from jax.experimental.pallas import tpu as pltpu


# ------------------------------ fused kernel --------------------------------

def _xl_attn_kernel(*refs, n_head, d_head, scale, is_causal, has_mask,
                    compute_dtype):
    if has_mask:
        (q_ref, c_ref, wq_ref, bq_ref, wkv_ref, bkv_ref,
         wo_ref, bo_ref, mask_ref, o_ref) = refs
    else:
        (q_ref, c_ref, wq_ref, bq_ref, wkv_ref, bkv_ref,
         wo_ref, bo_ref, o_ref) = refs
        mask_ref = None

    cd = compute_dtype
    f32 = jnp.float32

    q_in = q_ref[0].astype(cd)          # (Lq, D)
    c_in = c_ref[0].astype(cd)          # (Lk, D)

    # Fused projections on the MXU (weights already in compute dtype,
    # accumulation in f32, biases f32).
    qp = jnp.dot(q_in, wq_ref[...], preferred_element_type=f32) + bq_ref[...]
    kvp = jnp.dot(c_in, wkv_ref[...], preferred_element_type=f32) + bkv_ref[...]

    Lq, D = qp.shape
    Lk = kvp.shape[0]

    # Additive attention bias, shared across heads.
    bias = None
    if mask_ref is not None:
        bias = mask_ref[0]                                   # (Lq, Lk) f32
    if is_causal:
        # torch SDPA is_causal semantics: top-left aligned tril(Lq, Lk).
        row = jax.lax.broadcasted_iota(jnp.int32, (Lq, Lk), 0)
        col = jax.lax.broadcasted_iota(jnp.int32, (Lq, Lk), 1)
        causal = jnp.where(col <= row, 0.0, -jnp.inf).astype(f32)
        bias = causal if bias is None else bias + causal

    # TODO(synk): for long sequences, tile Lk flash-style (online softmax,
    # VMEM accumulator) — mandatory on v7x (64 MiB VMEM).
    head_outs = []
    for h in range(n_head):                                  # static unroll
        qh = qp[:, h * d_head:(h + 1) * d_head].astype(cd)          # (Lq, Dh)
        kh = kvp[:, h * d_head:(h + 1) * d_head].astype(cd)         # (Lk, Dh)
        vh = kvp[:, D + h * d_head:D + (h + 1) * d_head].astype(cd)  # (Lk, Dh)

        # Contract last dims directly — no in-kernel transpose of k.
        s = jax.lax.dot_general(
            qh, kh, dimension_numbers=(((1,), (1,)), ((), ())),
            preferred_element_type=f32) * scale                      # (Lq, Lk)
        if bias is not None:
            s = s + bias

        m = jnp.max(s, axis=-1, keepdims=True)
        p = jnp.exp(s - m)
        denom = jnp.sum(p, axis=-1, keepdims=True)
        oh = jnp.dot(p.astype(cd), vh, preferred_element_type=f32)
        oh = oh * pl.reciprocal(denom, approx=True)                  # EUP slot
        head_outs.append(oh)

    attn = jnp.concatenate(head_outs, axis=-1).astype(cd)            # (Lq, D)
    out = jnp.dot(attn, wo_ref[...], preferred_element_type=f32) + bo_ref[...]
    o_ref[0] = out.astype(o_ref.dtype)                               # lane-dense


# ------------------------------- module glue --------------------------------

def xl_attention(params, q, kv, mem=None, mask=None, is_causal=False,
                 compute_dtype=jnp.bfloat16):
    """Forward pass matching XLAttention.forward semantics."""
    n_head = params["n_head"]
    B, Lq, d_model = q.shape
    d_head = d_model // n_head

    if mem is not None:
        c = jnp.concatenate([mem, kv], axis=1)
        mem_length = c.shape[1] - Lq
    else:
        c = kv
        mem_length = 0
    Lk = c.shape[1]

    # ---- build (Bm, Lq, Lk) additive mask bias, broadcast over heads -------
    mask_bias = None
    mask_batched = False
    if mask is not None:
        m = mask
        if mem is not None:
            # F.pad(mask, (mem_length, 0, 0, 0), value=1): left-pad last dim.
            pad = [(0, 0)] * (m.ndim - 1) + [(mem_length, 0)]
            m = jnp.pad(m, pad, constant_values=1)
        if m.dtype == jnp.bool_:
            add = jnp.where(m, 0.0, -jnp.inf).astype(jnp.float32)
        else:
            add = m.astype(jnp.float32)
        # Right-align to 4D like torch SDPA broadcasting (B?, H?, Lq, Lk).
        add = add.reshape((1,) * (4 - add.ndim) + add.shape)
        if add.shape[1] != 1:
            # TODO(synk): per-head attn_mask needs an h-indexed bias BlockSpec.
            raise NotImplementedError("per-head attn_mask not supported")
        add = add[:, 0]                                      # (Bm, lq?, lk?)
        add = jnp.broadcast_to(add, (add.shape[0], Lq, Lk))
        mask_batched = add.shape[0] != 1
        mask_bias = add

    # ---- fuse K|V projection weights into one (D, 2D) matmul ---------------
    w_kv = jnp.concatenate([params["w_k"], params["w_v"]], axis=1)
    b_kv = jnp.concatenate([params["b_k"], params["b_v"]], axis=0)

    cd = compute_dtype
    wq = params["w_q"].astype(cd)
    wkv = w_kv.astype(cd)
    wo = params["w_o"].astype(cd)
    bq = params["b_q"].reshape(1, d_model).astype(jnp.float32)
    bkv = b_kv.reshape(1, 2 * d_model).astype(jnp.float32)
    bo = params["b_o"].reshape(1, d_model).astype(jnp.float32)

    kernel = functools.partial(
        _xl_attn_kernel, n_head=n_head, d_head=d_head,
        scale=1.0 / math.sqrt(d_head), is_causal=is_causal,
        has_mask=mask_bias is not None, compute_dtype=cd)

    const2 = lambda b: (0, 0)
    in_specs = [
        pl.BlockSpec((1, Lq, d_model), lambda b: (b, 0, 0)),   # q
        pl.BlockSpec((1, Lk, d_model), lambda b: (b, 0, 0)),   # c = [mem; kv]
        pl.BlockSpec((d_model, d_model), const2),              # w_q
        pl.BlockSpec((1, d_model), const2),                    # b_q
        pl.BlockSpec((d_model, 2 * d_model), const2),          # w_k | w_v
        pl.BlockSpec((1, 2 * d_model), const2),                # b_k | b_v
        pl.BlockSpec((d_model, d_model), const2),              # w_o
        pl.BlockSpec((1, d_model), const2),                    # b_o
    ]
    args = [q, c, wq, bq, wkv, bkv, wo, bo]
    if mask_bias is not None:
        if mask_batched:
            in_specs.append(pl.BlockSpec((1, Lq, Lk), lambda b: (b, 0, 0)))
        else:
            in_specs.append(pl.BlockSpec((1, Lq, Lk), lambda b: (0, 0, 0)))
        args.append(mask_bias)

    out = pl.pallas_call(
        kernel,
        out_shape=jax.ShapeDtypeStruct((B, Lq, d_model), jnp.float32),
        grid=(B,),
        in_specs=in_specs,
        out_specs=pl.BlockSpec((1, Lq, d_model), lambda b: (b, 0, 0)),
        compiler_params=pltpu.CompilerParams(
            dimension_semantics=("parallel",)),
    )(*args)
    return out


# ------------------------------ pure-JAX reference --------------------------

def _reference(params, q, kv, mem=None, mask=None, is_causal=False):
    n_head = params["n_head"]
    B, Lq, d_model = q.shape
    d_head = d_model // n_head
    if mem is not None:
        c = jnp.concatenate([mem, kv], axis=1)
        mem_length = c.shape[1] - Lq
    else:
        c = kv
        mem_length = 0
    Lk = c.shape[1]
    qp = q @ params["w_q"] + params["b_q"]
    kp = c @ params["w_k"] + params["b_k"]
    vp = c @ params["w_v"] + params["b_v"]
    split = lambda t, L: t.reshape(B, L, n_head, d_head).transpose(0, 2, 1, 3)
    qh, kh, vh = split(qp, Lq), split(kp, Lk), split(vp, Lk)
    s = jnp.einsum("bhid,bhjd->bhij", qh, kh) / math.sqrt(d_head)
    bias = jnp.zeros((1, 1, Lq, Lk), jnp.float32)
    if mask is not None:
        m = mask
        if mem is not None:
            pad = [(0, 0)] * (m.ndim - 1) + [(mem_length, 0)]
            m = jnp.pad(m, pad, constant_values=1)
        if m.dtype == jnp.bool_:
            add = jnp.where(m, 0.0, -jnp.inf).astype(jnp.float32)
        else:
            add = m.astype(jnp.float32)
        add = add.reshape((1,) * (4 - add.ndim) + add.shape)
        bias = bias + add
    if is_causal:
        causal = jnp.tril(jnp.ones((Lq, Lk), jnp.bool_))
        bias = bias + jnp.where(causal, 0.0, -jnp.inf)
    p = jax.nn.softmax(s + bias, axis=-1)
    o = jnp.einsum("bhij,bhjd->bhid", p, vh)
    o = o.transpose(0, 2, 1, 3).reshape(B, Lq, d_model)
    return o @ params["w_o"] + params["b_o"]


# ---------------------------------- main -------------------------------------

if __name__ == "__main__":
    d_model, n_head = 32, 4
    B, Lq, Lmem = 2, 8, 8

    key = jax.random.PRNGKey(0)
    keys = jax.random.split(key, 12)
    bound = 1.0 / math.sqrt(d_model)  # PyTorch Linear default init range

    def uni(k, shape):
        return jax.random.uniform(k, shape, jnp.float32, -bound, bound)

    params = dict(
        n_head=n_head,
        w_q=uni(keys[0], (d_model, d_model)), b_q=uni(keys[1], (d_model,)),
        w_k=uni(keys[2], (d_model, d_model)), b_k=uni(keys[3], (d_model,)),
        w_v=uni(keys[4], (d_model, d_model)), b_v=uni(keys[5], (d_model,)),
        w_o=uni(keys[6], (d_model, d_model)), b_o=uni(keys[7], (d_model,)),
    )

    q = jax.random.normal(keys[8], (B, Lq, d_model), jnp.float32)
    kv = jax.random.normal(keys[9], (B, Lq, d_model), jnp.float32)
    mem = jax.random.normal(keys[10], (B, Lmem, d_model), jnp.float32)

    # Boolean attn_mask in torch-SDPA layout (B, 1, Lq, Lq): batch 0 is
    # lower-triangular, batch 1 unmasked (every row keeps >=1 valid key).
    tril = jnp.tril(jnp.ones((Lq, Lq), jnp.bool_))
    full = jnp.ones((Lq, Lq), jnp.bool_)
    bmask = jnp.stack([tril, full])[:, None]

    cases = [
        dict(mem=mem, mask=None, is_causal=False),
        dict(mem=mem, mask=None, is_causal=True),
        dict(mem=mem, mask=bmask, is_causal=False),
        dict(mem=None, mask=None, is_causal=False),
    ]
    for cfg in cases:
        out = jax.block_until_ready(xl_attention(params, q, kv, **cfg))
        ref = _reference(params, q, kv, **cfg)
        assert out.shape == ref.shape
        # bf16 MXU operands + approx reciprocal -> relaxed tolerance.
        assert jnp.allclose(out, ref, atol=2e-2, rtol=2e-2), cfg

    print("KERNEL_OK")
</pallas_src>

<mosaic_0001>
module attributes {stable_mosaic.version = 11 : i64} {
  func.func @_xl_attn_kernel(%arg0: i32, %arg1: memref<1x8x32xf32, #tpu.memory_space<vmem>>, %arg2: memref<1x16x32xf32, #tpu.memory_space<vmem>>, %arg3: memref<32x32xbf16, #tpu.memory_space<vmem>>, %arg4: memref<1x32xf32, #tpu.memory_space<vmem>>, %arg5: memref<32x64xbf16, #tpu.memory_space<vmem>>, %arg6: memref<1x64xf32, #tpu.memory_space<vmem>>, %arg7: memref<32x32xbf16, #tpu.memory_space<vmem>>, %arg8: memref<1x32xf32, #tpu.memory_space<vmem>>, %arg9: memref<1x8x32xf32, #tpu.memory_space<vmem>>) attributes {dimension_semantics = [#tpu.dimension_semantics<parallel>], iteration_bounds = array<i64: 2>, scalar_prefetch = 0 : i64, scratch_operands = 0 : i64, tpu.core_type = #tpu.core_type<tc>, window_params = [{transform_indices = @transform_0, window_bounds = array<i64: 1, 8, 32>}, {transform_indices = @transform_1, window_bounds = array<i64: 1, 16, 32>}, {pipeline_mode = #tpu.pipeline_mode<synchronous>, transform_indices = @transform_2, window_bounds = array<i64: 32, 32>}, {pipeline_mode = #tpu.pipeline_mode<synchronous>, transform_indices = @transform_3, window_bounds = array<i64: 1, 32>}, {pipeline_mode = #tpu.pipeline_mode<synchronous>, transform_indices = @transform_4, window_bounds = array<i64: 32, 64>}, {pipeline_mode = #tpu.pipeline_mode<synchronous>, transform_indices = @transform_5, window_bounds = array<i64: 1, 64>}, {pipeline_mode = #tpu.pipeline_mode<synchronous>, transform_indices = @transform_6, window_bounds = array<i64: 32, 32>}, {pipeline_mode = #tpu.pipeline_mode<synchronous>, transform_indices = @transform_7, window_bounds = array<i64: 1, 32>}, {transform_indices = @transform_8, window_bounds = array<i64: 1, 8, 32>}]} {
    %c0 = arith.constant 0 : index
    %c0_0 = arith.constant 0 : index
    %c0_1 = arith.constant 0 : index
    %0 = vector.load %arg1[%c0, %c0_0, %c0_1] : memref<1x8x32xf32, #tpu.memory_space<vmem>>, vector<1x8x32xf32>
    %1 = vector.shape_cast %0 : vector<1x8x32xf32> to vector<8x32xf32>
    %2 = arith.truncf %1 : vector<8x32xf32> to vector<8x32xbf16>
    %c0_2 = arith.constant 0 : index
    %c0_3 = arith.constant 0 : index
    %c0_4 = arith.constant 0 : index
    %3 = vector.load %arg2[%c0_2, %c0_3, %c0_4] : memref<1x16x32xf32, #tpu.memory_space<vmem>>, vector<1x16x32xf32>
    %4 = vector.shape_cast %3 : vector<1x16x32xf32> to vector<16x32xf32>
    %5 = arith.truncf %4 : vector<16x32xf32> to vector<16x32xbf16>
    %c0_5 = arith.constant 0 : index
    %c0_6 = arith.constant 0 : index
    %6 = vector.load %arg3[%c0_5, %c0_6] : memref<32x32xbf16, #tpu.memory_space<vmem>>, vector<32x32xbf16>
    %cst = arith.constant dense<0.000000e+00> : vector<8x32xf32>
    %7 = tpu.matmul %2, %6, %cst {dimension_numbers = #tpu.dot_dimension_numbers<[1], [0], [0], [1], [0, 0, 1, 1], [], []>} : vector<8x32xbf16>, vector<32x32xbf16>, vector<8x32xf32> -> vector<8x32xf32>
    %c0_7 = arith.constant 0 : index
    %c0_8 = arith.constant 0 : index
    %8 = vector.load %arg4[%c0_7, %c0_8] : memref<1x32xf32, #tpu.memory_space<vmem>>, vector<1x32xf32>
    %9 = vector.broadcast %8 : vector<1x32xf32> to vector<8x32xf32>
    %10 = arith.addf %7, %9 : vector<8x32xf32>
    %c0_9 = arith.constant 0 : index
    %c0_10 = arith.constant 0 : index
    %11 = vector.load %arg5[%c0_9, %c0_10] : memref<32x64xbf16, #tpu.memory_space<vmem>>, vector<32x64xbf16>
    %cst_11 = arith.constant dense<0.000000e+00> : vector<16x64xf32>
    %12 = tpu.matmul %5, %11, %cst_11 {dimension_numbers = #tpu.dot_dimension_numbers<[1], [0], [0], [1], [0, 0, 1, 1], [], []>} : vector<16x32xbf16>, vector<32x64xbf16>, vector<16x64xf32> -> vector<16x64xf32>
    %c0_12 = arith.constant 0 : index
    %c0_13 = arith.constant 0 : index
    %13 = vector.load %arg6[%c0_12, %c0_13] : memref<1x64xf32, #tpu.memory_space<vmem>>, vector<1x64xf32>
    %14 = vector.broadcast %13 : vector<1x64xf32> to vector<16x64xf32>
    %15 = arith.addf %12, %14 : vector<16x64xf32>
    %16 = vector.extract_strided_slice %10 {offsets = [0, 0], sizes = [8, 8], strides = [1, 1]} : vector<8x32xf32> to vector<8x8xf32>
    %17 = arith.truncf %16 : vector<8x8xf32> to vector<8x8xbf16>
    %18 = vector.extract_strided_slice %15 {offsets = [0, 0], sizes = [16, 8], strides = [1, 1]} : vector<16x64xf32> to vector<16x8xf32>
    %19 = arith.truncf %18 : vector<16x8xf32> to vector<16x8xbf16>
    %20 = vector.extract_strided_slice %15 {offsets = [0, 32], sizes = [16, 8], strides = [1, 1]} : vector<16x64xf32> to vector<16x8xf32>
    %21 = arith.truncf %20 : vector<16x8xf32> to vector<16x8xbf16>
    %cst_14 = arith.constant dense<0.000000e+00> : vector<8x16xf32>
    %22 = tpu.matmul %17, %19, %cst_14 {dimension_numbers = #tpu.dot_dimension_numbers<[1], [1], [0], [0], [0, 0, 1, 0], [], []>} : vector<8x8xbf16>, vector<16x8xbf16>, vector<8x16xf32> -> vector<8x16xf32>
    %cst_15 = arith.constant 0.353553385 : f32
    %23 = vector.broadcast %cst_15 : f32 to vector<8x16xf32>
    %24 = arith.mulf %22, %23 : vector<8x16xf32>
    %cst_16 = arith.constant dense<0xFF800000> : vector<8xf32>
    %25 = vector.multi_reduction <maximumf>, %24, %cst_16 [1] : vector<8x16xf32> to vector<8xf32>
    %26 = vector.shape_cast %25 : vector<8xf32> to vector<8x1xf32>
    %27 = vector.broadcast %26 : vector<8x1xf32> to vector<8x16xf32>
    %28 = arith.subf %24, %27 : vector<8x16xf32>
    %29 = math.exp %28 : vector<8x16xf32>
    %cst_17 = arith.constant dense<0.000000e+00> : vector<8xf32>
    %30 = vector.multi_reduction <add>, %29, %cst_17 [1] : vector<8x16xf32> to vector<8xf32>
    %31 = vector.shape_cast %30 : vector<8xf32> to vector<8x1xf32>
    %32 = arith.truncf %29 : vector<8x16xf32> to vector<8x16xbf16>
    %cst_18 = arith.constant dense<0.000000e+00> : vector<8x8xf32>
    %33 = tpu.matmul %32, %21, %cst_18 {dimension_numbers = #tpu.dot_dimension_numbers<[1], [0], [0], [1], [0, 0, 1, 1], [], []>} : vector<8x16xbf16>, vector<16x8xbf16>, vector<8x8xf32> -> vector<8x8xf32>
    %34 = tpu.reciprocal %31 {approx = true} : vector<8x1xf32> -> vector<8x1xf32>
    %35 = vector.broadcast %34 : vector<8x1xf32> to vector<8x8xf32>
    %36 = arith.mulf %33, %35 : vector<8x8xf32>
    %37 = vector.extract_strided_slice %10 {offsets = [0, 8], sizes = [8, 8], strides = [1, 1]} : vector<8x32xf32> to vector<8x8xf32>
    %38 = arith.truncf %37 : vector<8x8xf32> to vector<8x8xbf16>
    %39 = vector.extract_strided_slice %15 {offsets = [0, 8], sizes = [16, 8], strides = [1, 1]} : vector<16x64xf32> to vector<16x8xf32>
    %40 = arith.truncf %39 : vector<16x8xf32> to vector<16x8xbf16>
    %41 = vector.extract_strided_slice %15 {offsets = [0, 40], sizes = [16, 8], strides = [1, 1]} : vector<16x64xf32> to vector<16x8xf32>
    %42 = arith.truncf %41 : vector<16x8xf32> to vector<16x8xbf16>
    %cst_19 = arith.constant dense<0.000000e+00> : vector<8x16xf32>
    %43 = tpu.matmul %38, %40, %cst_19 {dimension_numbers = #tpu.dot_dimension_numbers<[1], [1], [0], [0], [0, 0, 1, 0], [], []>} : vector<8x8xbf16>, vector<16x8xbf16>, vector<8x16xf32> -> vector<8x16xf32>
    %cst_20 = arith.constant 0.353553385 : f32
    %44 = vector.broadcast %cst_20 : f32 to vector<8x16xf32>
    %45 = arith.mulf %43, %44 : vector<8x16xf32>
    %cst_21 = arith.constant dense<0xFF800000> : vector<8xf32>
    %46 = vector.multi_reduction <maximumf>, %45, %cst_21 [1] : vector<8x16xf32> to vector<8xf32>
    %47 = vector.shape_cast %46 : vector<8xf32> to vector<8x1xf32>
    %48 = vector.broadcast %47 : vector<8x1xf32> to vector<8x16xf32>
    %49 = arith.subf %45, %48 : vector<8x16xf32>
    %50 = math.exp %49 : vector<8x16xf32>
    %cst_22 = arith.constant dense<0.000000e+00> : vector<8xf32>
    %51 = vector.multi_reduction <add>, %50, %cst_22 [1] : vector<8x16xf32> to vector<8xf32>
    %52 = vector.shape_cast %51 : vector<8xf32> to vector<8x1xf32>
    %53 = arith.truncf %50 : vector<8x16xf32> to vector<8x16xbf16>
    %cst_23 = arith.constant dense<0.000000e+00> : vector<8x8xf32>
    %54 = tpu.matmul %53, %42, %cst_23 {dimension_numbers = #tpu.dot_dimension_numbers<[1], [0], [0], [1], [0, 0, 1, 1], [], []>} : vector<8x16xbf16>, vector<16x8xbf16>, vector<8x8xf32> -> vector<8x8xf32>
    %55 = tpu.reciprocal %52 {approx = true} : vector<8x1xf32> -> vector<8x1xf32>
    %56 = vector.broadcast %55 : vector<8x1xf32> to vector<8x8xf32>
    %57 = arith.mulf %54, %56 : vector<8x8xf32>
    %58 = vector.extract_strided_slice %10 {offsets = [0, 16], sizes = [8, 8], strides = [1, 1]} : vector<8x32xf32> to vector<8x8xf32>
    %59 = arith.truncf %58 : vector<8x8xf32> to vector<8x8xbf16>
    %60 = vector.extract_strided_slice %15 {offsets = [0, 16], sizes = [16, 8], strides = [1, 1]} : vector<16x64xf32> to vector<16x8xf32>
    %61 = arith.truncf %60 : vector<16x8xf32> to vector<16x8xbf16>
    %62 = vector.extract_strided_slice %15 {offsets = [0, 48], sizes = [16, 8], strides = [1, 1]} : vector<16x64xf32> to vector<16x8xf32>
    %63 = arith.truncf %62 : vector<16x8xf32> to vector<16x8xbf16>
    %cst_24 = arith.constant dense<0.000000e+00> : vector<8x16xf32>
    %64 = tpu.matmul %59, %61, %cst_24 {dimension_numbers = #tpu.dot_dimension_numbers<[1], [1], [0], [0], [0, 0, 1, 0], [], []>} : vector<8x8xbf16>, vector<16x8xbf16>, vector<8x16xf32> -> vector<8x16xf32>
    %cst_25 = arith.constant 0.353553385 : f32
    %65 = vector.broadcast %cst_25 : f32 to vector<8x16xf32>
    %66 = arith.mulf %64, %65 : vector<8x16xf32>
    %cst_26 = arith.constant dense<0xFF800000> : vector<8xf32>
    %67 = vector.multi_reduction <maximumf>, %66, %cst_26 [1] : vector<8x16xf32> to vector<8xf32>
    %68 = vector.shape_cast %67 : vector<8xf32> to vector<8x1xf32>
    %69 = vector.broadcast %68 : vector<8x1xf32> to vector<8x16xf32>
    %70 = arith.subf %66, %69 : vector<8x16xf32>
    %71 = math.exp %70 : vector<8x16xf32>
    %cst_27 = arith.constant dense<0.000000e+00> : vector<8xf32>
    %72 = vector.multi_reduction <add>, %71, %cst_27 [1] : vector<8x16xf32> to vector<8xf32>
    %73 = vector.shape_cast %72 : vector<8xf32> to vector<8x1xf32>
    %74 = arith.truncf %71 : vector<8x16xf32> to vector<8x16xbf16>
    %cst_28 = arith.constant dense<0.000000e+00> : vector<8x8xf32>
    %75 = tpu.matmul %74, %63, %cst_28 {dimension_numbers = #tpu.dot_dimension_numbers<[1], [0], [0], [1], [0, 0, 1, 1], [], []>} : vector<8x16xbf16>, vector<16x8xbf16>, vector<8x8xf32> -> vector<8x8xf32>
    %76 = tpu.reciprocal %73 {approx = true} : vector<8x1xf32> -> vector<8x1xf32>
    %77 = vector.broadcast %76 : vector<8x1xf32> to vector<8x8xf32>
    %78 = arith.mulf %75, %77 : vector<8x8xf32>
    %79 = vector.extract_strided_slice %10 {offsets = [0, 24], sizes = [8, 8], strides = [1, 1]} : vector<8x32xf32> to vector<8x8xf32>
    %80 = arith.truncf %79 : vector<8x8xf32> to vector<8x8xbf16>
    %81 = vector.extract_strided_slice %15 {offsets = [0, 24], sizes = [16, 8], strides = [1, 1]} : vector<16x64xf32> to vector<16x8xf32>
    %82 = arith.truncf %81 : vector<16x8xf32> to vector<16x8xbf16>
    %83 = vector.extract_strided_slice %15 {offsets = [0, 56], sizes = [16, 8], strides = [1, 1]} : vector<16x64xf32> to vector<16x8xf32>
    %84 = arith.truncf %83 : vector<16x8xf32> to vector<16x8xbf16>
    %cst_29 = arith.constant dense<0.000000e+00> : vector<8x16xf32>
    %85 = tpu.matmul %80, %82, %cst_29 {dimension_numbers = #tpu.dot_dimension_numbers<[1], [1], [0], [0], [0, 0, 1, 0], [], []>} : vector<8x8xbf16>, vector<16x8xbf16>, vector<8x16xf32> -> vector<8x16xf32>
    %cst_30 = arith.constant 0.353553385 : f32
    %86 = vector.broadcast %cst_30 : f32 to vector<8x16xf32>
    %87 = arith.mulf %85, %86 : vector<8x16xf32>
    %cst_31 = arith.constant dense<0xFF800000> : vector<8xf32>
    %88 = vector.multi_reduction <maximumf>, %87, %cst_31 [1] : vector<8x16xf32> to vector<8xf32>
    %89 = vector.shape_cast %88 : vector<8xf32> to vector<8x1xf32>
    %90 = vector.broadcast %89 : vector<8x1xf32> to vector<8x16xf32>
    %91 = arith.subf %87, %90 : vector<8x16xf32>
    %92 = math.exp %91 : vector<8x16xf32>
    %cst_32 = arith.constant dense<0.000000e+00> : vector<8xf32>
    %93 = vector.multi_reduction <add>, %92, %cst_32 [1] : vector<8x16xf32> to vector<8xf32>
    %94 = vector.shape_cast %93 : vector<8xf32> to vector<8x1xf32>
    %95 = arith.truncf %92 : vector<8x16xf32> to vector<8x16xbf16>
    %cst_33 = arith.constant dense<0.000000e+00> : vector<8x8xf32>
    %96 = tpu.matmul %95, %84, %cst_33 {dimension_numbers = #tpu.dot_dimension_numbers<[1], [0], [0], [1], [0, 0, 1, 1], [], []>} : vector<8x16xbf16>, vector<16x8xbf16>, vector<8x8xf32> -> vector<8x8xf32>
    %97 = tpu.reciprocal %94 {approx = true} : vector<8x1xf32> -> vector<8x1xf32>
    %98 = vector.broadcast %97 : vector<8x1xf32> to vector<8x8xf32>
    %99 = arith.mulf %96, %98 : vector<8x8xf32>
    %100 = tpu.concatenate %36, %57, %78, %99 in 1 : vector<8x8xf32>, vector<8x8xf32>, vector<8x8xf32>, vector<8x8xf32> -> vector<8x32xf32>
    %101 = arith.truncf %100 : vector<8x32xf32> to vector<8x32xbf16>
    %c0_34 = arith.constant 0 : index
    %c0_35 = arith.constant 0 : index
    %102 = vector.load %arg7[%c0_34, %c0_35] : memref<32x32xbf16, #tpu.memory_space<vmem>>, vector<32x32xbf16>
    %cst_36 = arith.constant dense<0.000000e+00> : vector<8x32xf32>
    %103 = tpu.matmul %101, %102, %cst_36 {dimension_numbers = #tpu.dot_dimension_numbers<[1], [0], [0], [1], [0, 0, 1, 1], [], []>} : vector<8x32xbf16>, vector<32x32xbf16>, vector<8x32xf32> -> vector<8x32xf32>
    %c0_37 = arith.constant 0 : index
    %c0_38 = arith.constant 0 : index
    %104 = vector.load %arg8[%c0_37, %c0_38] : memref<1x32xf32, #tpu.memory_space<vmem>>, vector<1x32xf32>
    %105 = vector.broadcast %104 : vector<1x32xf32> to vector<8x32xf32>
    %106 = arith.addf %103, %105 : vector<8x32xf32>
    %c0_39 = arith.constant 0 : index
    %c0_40 = arith.constant 0 : index
    %c0_41 = arith.constant 0 : index
    %107 = vector.load %arg9[%c0_39, %c0_40, %c0_41] : memref<1x8x32xf32, #tpu.memory_space<vmem>>, vector<1x8x32xf32>
    %108 = vector.shape_cast %107 : vector<1x8x32xf32> to vector<8x32xf32>
    %109 = vector.shape_cast %106 : vector<8x32xf32> to vector<1x8x32xf32>
    tpu.vector_store %arg9[%c0_39, %c0_40, %c0_41], %109 {strides = array<i32>} : memref<1x8x32xf32, #tpu.memory_space<vmem>>, vector<1x8x32xf32>,
    return
  }
  func.func @transform_0(%arg0: i32) -> (i32, i32, i32) {
    %c0_i32 = arith.constant 0 : i32
    %c0_i32_0 = arith.constant 0 : i32
    %c0_i32_1 = arith.constant 0 : i32
    return %arg0, %c0_i32, %c0_i32_0 : i32, i32, i32
  }
  func.func @transform_1(%arg0: i32) -> (i32, i32, i32) {
    %c0_i32 = arith.constant 0 : i32
    %c0_i32_0 = arith.constant 0 : i32
    %c0_i32_1 = arith.constant 0 : i32
    return %arg0, %c0_i32, %c0_i32_0 : i32, i32, i32
  }
  func.func @transform_2(%arg0: i32) -> (i32, i32) {
    %c0_i32 = arith.constant 0 : i32
    %c0_i32_0 = arith.constant 0 : i32
    %c0_i32_1 = arith.constant 0 : i32
    return %c0_i32, %c0_i32_0 : i32, i32
  }
  func.func @transform_3(%arg0: i32) -> (i32, i32) {
    %c0_i32 = arith.constant 0 : i32
    %c0_i32_0 = arith.constant 0 : i32
    %c0_i32_1 = arith.constant 0 : i32
    return %c0_i32, %c0_i32_0 : i32, i32
  }
  func.func @transform_4(%arg0: i32) -> (i32, i32) {
    %c0_i32 = arith.constant 0 : i32
    %c0_i32_0 = arith.constant 0 : i32
    %c0_i32_1 = arith.constant 0 : i32
    return %c0_i32, %c0_i32_0 : i32, i32
  }
  func.func @transform_5(%arg0: i32) -> (i32, i32) {
    %c0_i32 = arith.constant 0 : i32
    %c0_i32_0 = arith.constant 0 : i32
    %c0_i32_1 = arith.constant 0 : i32
    return %c0_i32, %c0_i32_0 : i32, i32
  }
  func.func @transform_6(%arg0: i32) -> (i32, i32) {
    %c0_i32 = arith.constant 0 : i32
    %c0_i32_0 = arith.constant 0 : i32
    %c0_i32_1 = arith.constant 0 : i32
    return %c0_i32, %c0_i32_0 : i32, i32
  }
  func.func @transform_7(%arg0: i32) -> (i32, i32) {
    %c0_i32 = arith.constant 0 : i32
    %c0_i32_0 = arith.constant 0 : i32
    %c0_i32_1 = arith.constant 0 : i32
    return %c0_i32, %c0_i32_0 : i32, i32
  }
  func.func @transform_8(%arg0: i32) -> (i32, i32, i32) {
    %c0_i32 = arith.constant 0 : i32
    %c0_i32_0 = arith.constant 0 : i32
    %c0_i32_1 = arith.constant 0 : i32
    return %arg0, %c0_i32, %c0_i32_0 : i32, i32, i32
  }
}

</mosaic_0001>

<bundles_post_ra>
// kernel: tpu_custom_call.1
= control target key start
LH: loop header
LB: loop body
LE: loop exit
PB: predicated region body
PF: predicated region fallthrough
CT: control target
= control target key end

     0   :  { %s2062_s0 = inlined_call_operand.hbm [shape: f32[2,8,32], index: 0, kind: input, shape index: {}]   ;;  %s2063_s1 = inlined_call_operand.hbm [shape: f32[2,16,32], index: 1, kind: input, shape index: {}]   ;;  %s2064_s2 = inlined_call_operand.hbm [shape: bf16[32,32], index: 2, kind: input, shape index: {}]   ;;  %s2065_s3 = inlined_call_operand.vmem [shape: f32[1,32], index: 3, kind: input, shape index: {}]   ;;  %s2066_s4 = inlined_call_operand.hbm [shape: bf16[32,64], index: 4, kind: input, shape index: {}]   ;;  %s2067_s5 = inlined_call_operand.vmem [shape: f32[1,64], index: 5, kind: input, shape index: {}]   ;;  %s2068_s6 = inlined_call_operand.vmem [shape: bf16[32,32], index: 6, kind: input, shape index: {}]   ;;  %s2069_s7 = inlined_call_operand.vmem [shape: f32[1,32], index: 7, kind: input, shape index: {}]   ;;  %s2070_s8 = inlined_call_operand.hbm [shape: f32[2,8,32], index: 8, kind: output, shape index: {}]  }
   0x1   :  { %2074 = sst [smem:[#allocation17_spill]] %s2062_s0 }
   0x2   :  { %2075 = sst [smem:[#allocation18_spill]] %s2064_s2 }
   0x3   :  { %2076 = sst [smem:[#allocation19_spill]] %s2066_s4 }
   0x4   :  { %13 = vsyncpa [#allocation3], 0 }
   0x5   :  { %15 = vsyncpa [#allocation3 + $0x1], 0 }
   0x6   :  { %16 = vsyncpa [#allocation6], 0 }
   0x7   :  { %18 = vsyncpa [#allocation6 + $0x1], 0 }
   0x8   :  { %19 = vsyncpa [#allocation9], 0 }
   0x9   :  { %20 = vsyncpa [#allocation4], 0 }
   0xa   :  { %22 = vsyncpa [#allocation4 + $0x1], 0  ;;  %s1688_s27 = smov 0   ;;  %s1690_s28 = smov 0  }
   0xb   :  { %s1692_s29 = smov 0   ;;  %s1694_s30 = smov 0  }
   0xc LB: > { %s1709_s9 = sadd.s32 4294967295, %s1620_s30   ;;  %s1178_s10 = sadd.s32 4294967294, %s1620_s30   ;;  %s1620_s30 = sphi %s1694_s30, %s2101_s30   ;;  %s1616_s29 = sphi %s1692_s29, %s2100_s29   ;;  %s1612_s28 = sphi %s1690_s28, %s2099_s28   ;;  %s1608_s27 = sphi %s1688_s27, %s2098_s27  }
   0xd   : > { %p48_p0 = scmp.ne.s32.totalorder %s1612_s28, %s1608_s27  ;;  %p2071_p1 = scmp.eq.s32.totalorder %s1709_s9, 0 }
   0xe   : > { %p230_p3 = scmp.eq.s32.totalorder %s1178_s10, 1  ;;  %p1179_p5 = scmp.ge.s32.totalorder %s1620_s30, 1 }
   0xf   : > { %p1718_p4 = por %p2071_p1, %p48_p0  ;;  %p237_p7 = scmp.lt.s32.totalorder %s1620_s30, 3 }
  0x10   : > { %p1723_p6 = por %p230_p3, %p48_p0  ;;  %s1622_s14 = smov [#allocation7]  }
  0x11   : > { %s2077_s11 = scalar_select %p1718_p4, 1, 0 }
  0x12   : > { %s2078_s12 = scalar_select %p1723_p6, 1, 0 }
  0x13   : > { %p1728_p8 = pnand %p1179_p5, %p237_p7  ;;  %s249_s15 = sshll.u32 %s1622_s14, 4  ;;  %s1732_s15 = int_to_ptr.vmem [resolvable:$true] %s249_s15 }
  0x14   : > { %s1623_s17 = smov [#allocation8]   ;;  %s2081_s2 = sld [smem:[#allocation18_spill]] }
  0x15   : > { %p1330_p9 = pneg %p1728_p8  ;;  %s265_s18 = sshll.u32 %s1623_s17, 4  ;;  %s1743_s18 = int_to_ptr.vmem [resolvable:$true] %s265_s18 }
  0x17   : > { %p1739_p11 = pnand %p1330_p9, %p2071_p1 }
  0x19   : > { %p1428_p13 = pneg %p1739_p11 }
  0x1a   : > { %s1426_s21 = scalar_lea.hbm %s2081_s2, 256 }
  0x1b   : > { %p1427_p12 = scmp.ne.s32.totalorder %s2081_s2, %s1426_s21  ;;  %p1433_p5 = scmp.lt.u32.totalorder %s1426_s21, %s2081_s2 }
  0x1d   : > { %p1429_p0 = pnand %p1428_p13, %p1427_p12 }
  0x1f   : > { %p1430_p3 = pneg %p1429_p0 }
  0x21   : > { %p1435_p7 = pnand %p1433_p5, %p1430_p3 }
  0x23   : > { %1438 = shalt.err (!%p1435_p7)
}
  0x24   : > { %s1439_s26 = scalar_lea.vmem %s1732_s15, 256  ;;  %p1447_p2 = scmp.lt.s32.totalorder %s1732_s15, %s1732_s15 }
  0x25   : > { %p1440_p9 = scmp.ne.s32.totalorder %s1732_s15, %s1439_s26  ;;  %p1448_p12 = scmp.lt.s32.totalorder %s1439_s26, %s1439_s26 }
  0x27   : > { %p1442_p10 = pnand %p1440_p9, %p1428_p13  ;;  %p1449_p0 = por %p1448_p12, %p1447_p2 }
  0x29   : > { %p1443_p1 = pneg %p1442_p10 }
  0x2b   : > { %p1450_p6 = pnand %p1449_p0, %p1443_p1 }
  0x2d   : > { %1453 = shalt.err (!%p1450_p6)
}
  0x2e   : > { %s1624_s10 = smov 64   ;;  %s1625_s14 = smov 4  }
  0x2f   : > { %1333 = dma.hbm_to_vmem [thread:$0]  (!%p1739_p11), %s2081_s2, 256, %s1732_s15, [#allocation6], %s1624_s10, %s1624_s10, %s1625_s14  }
  0x30   : > { %s2082_s4 = sld [smem:[#allocation19_spill]] }
  0x36   : > { %s1454_s22 = scalar_lea.hbm %s2082_s4, 256 }
  0x37   : > { %p1455_p2 = scmp.ne.s32.totalorder %s2082_s4, %s1454_s22  ;;  %p1461_p10 = scmp.lt.u32.totalorder %s1454_s22, %s2082_s4 }
  0x39   : > { %p1457_p1 = pnand %p1455_p2, %p1428_p13 }
  0x3b   : > { %p1458_p6 = pneg %p1457_p1 }
  0x3d   : > { %p1463_p3 = pnand %p1461_p10, %p1458_p6 }
  0x3f   : > { %1466 = shalt.err (!%p1463_p3)
}
  0x40   : > { %s1467_s15 = scalar_lea.vmem %s1743_s18, 256  ;;  %p1475_p12 = scmp.lt.s32.totalorder %s1743_s18, %s1743_s18 }
  0x41   : > { %p1468_p5 = scmp.ne.s32.totalorder %s1743_s18, %s1467_s15  ;;  %p1476_p0 = scmp.lt.s32.totalorder %s1467_s15, %s1467_s15 }
  0x43   : > { %p1470_p7 = pnand %p1468_p5, %p1428_p13  ;;  %p1477_p2 = por %p1476_p0, %p1475_p12 }
  0x45   : > { %p1471_p9 = pneg %p1470_p7 }
  0x47   : > { %p1478_p1 = pnand %p1477_p2, %p1471_p9 }
  0x49   : > { %1481 = shalt.err (!%p1478_p1)
}
  0x4a   : > { %1336 = dma.hbm_to_vmem [thread:$0]  (!%p1739_p11), %s2082_s4, 256, %s1743_s18, [#allocation9], %s1624_s10, %s1624_s10, %s1625_s14  }
  0x4b   : > { %s1798_s20 = sadd.s32 1, %s1620_s30   ;;  %s35_s16 = sadd.s32 1, %s1616_s29 }
  0x4c   : > { %s32_s21 = ssub.s32 %s1620_s30, %s1798_s20  ;;  %p42_p13 = scmp.ne.s32.totalorder %s1616_s29, %s1612_s28 }
  0x4d   : > { %p33_p6 = scmp.eq.s32.totalorder %s32_s21, 0  ;;  %p43_p10 = scmp.eq.s32.totalorder %s1620_s30, 0 }
  0x4e   : > { %p2083_p3 = scmp.eq.s32.totalorder %s1709_s9, 1  ;;  %p1350_p7 = scmp.lt.s32.totalorder %s1620_s30, 2 }
  0x4f   : > { %s1814_s23 = scalar_select %p33_p6, %s1616_s29, %s35_s16  }
  0x50   : > { %p1808_p5 = por %p2083_p3, %p42_p13  ;;  %p44_p9 = por %p43_p10, %p42_p13 }
  0x51   : > { %2085 = sst [smem:[#allocation16_spill]] %s1814_s23  ;;  %s1817_s24 = sand.u32 1, %s1616_s29  }
  0x52   : > { %s2084_s22 = scalar_select %p1808_p5, 1, 0 }
  0x53   : > { %s1183_s18 = sshll.u32 %s1817_s24, 3  ;;  %s1184_s10 = sshll.u32 %s1620_s30, 7 }
  0x54   : > { %s2086_s0 = sld [smem:[#allocation17_spill]]  ;;  %s292_s15 = scalar_lea.vmem [#allocation2], %s1183_s18 }
  0x55   : > { %s299_s17 = sshll.u32 %s292_s15, 4  ;;  %p1828_p11 = pnand %p1350_p7, %p44_p9  ;;  %s1826_s17 = int_to_ptr.vmem [resolvable:$true] %s299_s17 }
  0x56   : > { %s1185_s16 = sshll.u32 %s1817_s24, 4  ;;  %s289_s2 = scalar_lea.sflag [#allocation3], %s1817_s24 }
  0x57   : > { %p1484_p0 = pneg %p1828_p11 }
  0x5a   : > { %s1824_s26 = scalar_lea.hbm %s2086_s0, %s1184_s10  ;;  %s1487_s25 = scalar_lea.hbm %s2086_s0, 256 }
  0x5b   : > { %s1482_s14 = scalar_lea.hbm %s1824_s26, 128  ;;  %p1488_p13 = scmp.lt.u32.totalorder %s1824_s26, %s2086_s0 }
  0x5c   : > { %p1483_p12 = scmp.ne.s32.totalorder %s1824_s26, %s1482_s14  ;;  %p1489_p6 = scmp.lt.u32.totalorder %s1487_s25, %s1482_s14 }
  0x5d   : > { %p1491_p3 = scmp.lt.u32.totalorder %s1482_s14, %s1824_s26 }
  0x5e   : > { %p1485_p2 = pnand %p1484_p0, %p1483_p12  ;;  %p1490_p10 = por %p1489_p6, %p1488_p13 }
  0x60   : > { %p1486_p1 = pneg %p1485_p2  ;;  %p1492_p7 = por %p1491_p3, %p1490_p10 }
  0x62   : > { %p1493_p9 = pnand %p1492_p7, %p1486_p1 }
  0x64   : > { %1496 = shalt.err (!%p1493_p9)
}
  0x65   : > { %s1497_s21 = scalar_lea.vmem %s1826_s17, 128  ;;  %s1626_s18 = smov [#allocation2]  }
  0x66   : > { %p1498_p12 = scmp.ne.s32.totalorder %s1826_s17, %s1497_s21  ;;  %s1502_s10 = sshll.u32 %s1626_s18, 4  ;;  %s1503_s10 = int_to_ptr.vmem [resolvable:$false] %s1502_s10 }
  0x67   : > { %s1504_s4 = scalar_lea.vmem %s1503_s10, 256  ;;  %p1505_p4 = scmp.lt.s32.totalorder %s1826_s17, %s1503_s10 }
  0x68   : > { %p1500_p2 = pnand %p1498_p12, %p1484_p0  ;;  %p1506_p13 = scmp.lt.s32.totalorder %s1504_s4, %s1497_s21 }
  0x6a   : > { %p1501_p5 = pneg %p1500_p2  ;;  %p1507_p6 = por %p1506_p13, %p1505_p4 }
  0x6c   : > { %p1508_p10 = pnand %p1507_p6, %p1501_p5 }
  0x6e   : > { %1511 = shalt.err (!%p1508_p10)
}
  0x6f   : > { %1340 = dma.hbm_to_vmem [thread:$0]  (!%p1828_p11), %s1824_s26, 128, %s1826_s17, %s289_s2  }
  0x70   : > { %s310_s14 = scalar_lea.vmem [#allocation5], %s1185_s16  ;;  %s1218_s15 = sshll.u32 %s1620_s30, 8 }
  0x71   : > { %s317_s25 = sshll.u32 %s310_s14, 4  ;;  %s1868_s10 = scalar_lea.hbm %s2063_s1, %s1218_s15  ;;  %s1862_s25 = int_to_ptr.vmem [resolvable:$true] %s317_s25 }
  0x72   : > { %s2088_s4 = sand.u32 1, %s1620_s30   ;;  %s1512_s23 = scalar_lea.hbm %s1868_s10, 256 }
  0x73   : > { %s1872_s0 = scalar_lea.sflag [#allocation6], %s2088_s4  ;;  %p1513_p4 = scmp.ne.s32.totalorder %s1868_s10, %s1512_s23 }
  0x74   : > { %s1517_s26 = scalar_lea.hbm %s2063_s1, 512  ;;  %p1518_p3 = scmp.lt.u32.totalorder %s1868_s10, %s2063_s1 }
  0x75   : > { %p1515_p5 = pnand %p1513_p4, %p1484_p0  ;;  %p1519_p7 = scmp.lt.u32.totalorder %s1517_s26, %s1512_s23 }
  0x76   : > { %p1521_p12 = scmp.lt.u32.totalorder %s1512_s23, %s1868_s10 }
  0x77   : > { %p1516_p1 = pneg %p1515_p5  ;;  %p1520_p9 = por %p1519_p7, %p1518_p3 }
  0x79   : > { %p1522_p2 = por %p1521_p12, %p1520_p9 }
  0x7b   : > { %p1523_p13 = pnand %p1522_p2, %p1516_p1 }
  0x7d   : > { %1526 = shalt.err (!%p1523_p13)
}
  0x7e   : > { %s1527_s14 = scalar_lea.vmem %s1862_s25, 256  ;;  %s1627_s15 = smov [#allocation5]  }
  0x7f   : > { %p1528_p6 = scmp.ne.s32.totalorder %s1862_s25, %s1527_s14  ;;  %s1532_s18 = sshll.u32 %s1627_s15, 4  ;;  %s1533_s18 = int_to_ptr.vmem [resolvable:$false] %s1532_s18 }
  0x80   : > { %s1534_s21 = scalar_lea.vmem %s1533_s18, 512  ;;  %p1535_p5 = scmp.lt.s32.totalorder %s1862_s25, %s1533_s18 }
  0x81   : > { %p1530_p10 = pnand %p1528_p6, %p1484_p0  ;;  %p1536_p3 = scmp.lt.s32.totalorder %s1534_s21, %s1527_s14 }
  0x83   : > { %p1531_p4 = pneg %p1530_p10  ;;  %p1537_p7 = por %p1536_p3, %p1535_p5 }
  0x85   : > { %p1538_p9 = pnand %p1537_p7, %p1531_p4 }
  0x87   : > { %1541 = shalt.err (!%p1538_p9)
}
  0x88   : > { %s1628_s23 = smov 128   ;;  %s1629_s4 = smov 8  }
  0x89   : > { %1343 = dma.hbm_to_vmem [thread:$0]  (!%p1828_p11), %s1868_s10, 256, %s1862_s25, %s1872_s0, %s1628_s23, %s1628_s23, %s1629_s4  }
  0x8a   : > { %329 = sbr.rel (%p1728_p8) target bundleno = 1462 (0x5b6), region = 52  ;;  %s1901_s2 = sand.u32 (!%p1728_p8), 1, %s1612_s28  }
  0x8b   : > { %s1189_s24 = sshll.u32 (!%p1728_p8), %s1901_s2, 3  ;;  %s332_s26 = scalar_lea.sflag (!%p1728_p8), [#allocation3], %s1901_s2 }
  0x8c   : > { %s335_s17 = scalar_lea.vmem (!%p1728_p8), [#allocation2], %s1189_s24  ;;  %p2089_p0 = scmp.ne.s32.totalorder (!%p1728_p8), %s2077_s11, 0 }
  0x91   : > { %1587 = dma.done.wait (%p2089_p0), %s332_s26, 128  }
  0x92   : > { %1589 = vsyncadd (%p2089_p0), %s332_s26, 4294967168  ;;  %s340_s0 = sand.u32 1, %s1709_s9   ;;  %s1190_s13 = sshll.u32 %s1901_s2, 4 }
  0x93   : > { %s341_s19 = scalar_lea.sflag [#allocation6], %s340_s0  ;;  %s344_s25 = scalar_lea.vmem [#allocation5], %s1190_s13 }
  0x94   : > { %1591 = dma.done.wait (%p2089_p0), %s341_s19, 256  }
  0x95   : > { %1593 = vsyncadd (%p2089_p0), %s341_s19, 4294967040  ;;  %p2090_p8 = scmp.eq.s32.totalorder %s1709_s9, 0 }
  0x97   : > { %1595 = dma.done.wait (%p2090_p8), [#allocation6], 256   ;;  %p2091_p11 = pmov %p2090_p8 }
  0x98   : > { %p2092_p1 = pmov %p2090_p8 }
  0x99   : > { %1597 = vsyncadd (%p2091_p11), [#allocation6], 4294967040 }
  0x9a   : > { %1599 = dma.done.wait (%p2092_p1), [#allocation9], 256   ;;  %p2093_p12 = pmov %p2092_p1 }
  0x9b   : > { %v1630_v0 = vmov 0.0   ;;  %vm1631_vm0 = vmmov 0   ;;  %v1404_v1 = vld [vmem:[#allocation8] sm:$0xff]   ;;  %v1405_v2 = vld [vmem:[#allocation8 + $0x8] sm:$0xff]   ;;  %v1406_v3 = vld [vmem:[#allocation7] sm:$0xff]   ;;  %vm419_vm1 = vcmask 261120  }
  0x9c   : > { %1601 = vsyncadd (%p2093_p12), [#allocation9], 4294967040  ;;  %1252 = vmatprep.subr.bf16.mxu1 %v1630_v0  ;;  %1244 = vmatprep.subr.bf16.mxu0 %v1630_v0  ;;  %v393_v4 = vld [vmem:[%s344_s25] sm:$0xff]  ;;  %v394_v5 = vld [vmem:[%s344_s25 + $0x8] sm:$0xff]  ;;  %vm532_vm2 = vcmask 64512   ;;  %s1632_s15 = smov 112  }
  0x9d   : > { %1256 = vmatprep.mubr.msk.bf16.mxu1 %vm1631_vm0, %v1630_v0  ;;  %1248 = vmatprep.mubr.msk.bf16.mxu0 %vm1631_vm0, %v1630_v0  ;;  %v1407_v6 = vld [vmem:[#allocation7 + $0x8] sm:$0xff]   ;;  %v391_v7 = vld [vmem:[%s335_s17] sm:$0xff]  ;;  %v395_v8 = vpack.c.bf16 %v394_v5, %v393_v4  ;;  %s1633_s18 = smov 120   ;;  %s1634_s21 = smov 104   ;;  %vm580_vm3 = vcmask 130048   ;;  %vm982_vm4 = vcmask 195584  }
  0x9e   : > { %1253 = vmatpush3.bf16.msra.mxu1 %v1404_v1  ;;  %1245 = vmatpush3.bf16.msra.mxu0 %v1406_v3  ;;  %v392_v9 = vpack.c.bf16 %v391_v7, %v391_v7  ;;  %v1198_v10 = vld [vmem:[%s2067_s5] ss:$0 sm:$0xff]  ;;  %s1635_s23 = smov 96   ;;  %s1636_s4 = smov 80  }
  0x9f   : > { %1254 = vmatprep.subr.bf16.mxu1 %v1630_v0  ;;  %1246 = vmatprep.subr.bf16.mxu0 %v1630_v0  ;;  %v1194_v12 = vld [vmem:[%s2065_s3] ss:$0 sm:$0xff]  ;;  %s1637_s26 = smov 72   ;;  %s1638_s17 = smov 88  }
  0xa0   : > { %s1639_s19 = smov 8   ;;  %s1640_s10 = smov 16  }
  0xa1   : > { %s1641_s16 = smov 24   ;;  %p2094_p13 = scmp.ne.s32.totalorder %s2084_s22, 0 }
  0xa2   : > { %1255 = vmatpush3.bf16.msra.mxu1 %v1405_v2  ;;  %1247 = vmatpush3.bf16.msra.mxu0 %v1407_v6  ;;  %s1642_s0 = smov [#allocation10]  }
  0xa3   : > { %1266 = vmatprep.subr.bf16.mxu1 %v1630_v0  ;;  %1260 = vmatprep.subr.bf16.mxu0 %v1630_v0  ;;  %s1546_s13 = sshll.u32 %s1642_s0, 4  ;;  %s1547_s13 = int_to_ptr.vmem [resolvable:$false] %s1546_s13 }
  0xa5   : > { %1257 = vmatmul.mubr.msk.bf16.vlgmr.msra.gmra.mrb[0].mxu1 %vm419_vm1, %v395_v8  ;;  %1249 = vmatmul.mubr.msk.bf16.vlgmr.msra.gmra.mrb[0].mxu0 %vm419_vm1, %v392_v9 }
  0xa6   : > { %1268 = vmatprep.mubr.msk.bf16.mxu1 %vm1631_vm0, %v1630_v0  ;;  %1262 = vmatprep.mubr.msk.bf16.mxu0 %vm1631_vm0, %v1630_v0 }
 0x178   : > { %v523_v11 = vpop.f32.mrb[0].mxu1  ;;  %v457_v15 = vpop.f32.mrb[0].mxu0 }
 0x179   : > { %v1258_v13 = vpop.f32.mrb[1].mxu1  ;;  %v524_v16 = vadd.f32 %v1198_v10, %v523_v11  ;;  %v458_v19 = vadd.f32 %v1194_v12, %v457_v15  ;;  %v1250_v20 = vpop.f32.mrb[1].mxu0 }
 0x17a   : > { %v526_v14 = vpop.f32.mrb[2].mxu1  ;;  %v460_v21 = vpop.f32.mrb[2].mxu0 }
 0x17b   : > { %v527_v17 = vadd.f32 %v1198_v10, %v526_v14  ;;  %v1259_v18 = vpop.f32.mrb[3].mxu1  ;;  %v1251_v23 = vpop.f32.mrb[3].mxu0  ;;  %v530_v24 = vpack.c.bf16 %v458_v19, %v458_v19 }
 0x17d   : > { %v1947_v22 = vpack.c.bf16 %v527_v17, %v524_v16 }
 0x17f   : > { %752 = vrot.lane.b32.xlu1 %v1947_v22, %s1632_s15  ;;  %643 = vrot.lane.b32.xlu0 %v1947_v22, %s1633_s18  ;;  %v537_v25 = vsel %vm532_vm2, %v1947_v22, 0 }
 0x180   : > { %1261 = vmatpush3.bf16.xpose.msra.mxu0 %v537_v25 }
 0x181   : > { %1272 = vmatprep.subr.bf16.mxu0 %v1630_v0 }
 0x183   : > { %750 = vrot.lane.b32.xlu1 %v530_v24, %s1632_s15  ;;  %641 = vrot.lane.b32.xlu0 %v530_v24, %s1633_s18  ;;  %s1215_s18 = sshll.u32 %s1709_s9, 7  ;;  %s1053_s9 = scalar_lea.sflag [#allocation4], %s1901_s2 }
 0x187   : > { %859 = vrot.lane.b32.xlu1 %v530_v24, %s1634_s21  ;;  %861 = vrot.lane.b32.xlu0 %v1947_v22, %s1634_s21  ;;  %s389_s21 = scalar_lea.vmem [#allocation10], %s1189_s24 }
 0x188   : > { %1263 = vmatmul.mubr.msk.bf16.vlgmr.msra.gmra.mrb[4].mxu0 %vm532_vm2, %v530_v24 }
 0x189   : > { %1274 = vmatprep.mubr.msk.bf16.mxu0 %vm1631_vm0, %v1630_v0 }
 0x18b   : > { %592 = vrot.lane.b32.xlu1 %v1947_v22, %s1635_s23  ;;  %s1066_s23 = sshll.u32 %s389_s21, 4  ;;  %s2019_s23 = int_to_ptr.vmem [resolvable:$true] %s1066_s23 }
 0x18c   : > { %s1542_s24 = scalar_lea.vmem %s2019_s23, 128  ;;  %p1549_p4 = scmp.lt.s32.totalorder %s2019_s23, %s1547_s13 }
 0x18d   : > { %p1543_p2 = scmp.ne.s32.totalorder %s2019_s23, %s1542_s24 }
 0x18f   : > { %p1544_p6 = pnand %p1543_p2, %p2094_p13 }
 0x191   : > { %p1545_p10 = pneg %p1544_p6 }
 0x1f1   : > { %v753_v26 = vpop.permute.xlu1 %752  ;;  %v644_v27 = vpop.permute.xlu0 %643 }
 0x1f2   : > { %v649_v28 = vsel %vm532_vm2, %v644_v27, 0  ;;  %v758_v32 = vsel %vm532_vm2, %v753_v26, 0 }
 0x1f3   : > { %1273 = vmatpush3.bf16.xpose.msra.mxu0 %v649_v28 }
 0x1f4   : > { %1284 = vmatprep.subr.bf16.mxu0 %v1630_v0 }
 0x1f5   : > { %v751_v29 = vpop.permute.xlu1 %750  ;;  %v642_v30 = vpop.permute.xlu0 %641 }
 0x1f9   : > { %v860_v31 = vpop.permute.xlu1 %859  ;;  %v862_v34 = vpop.permute.xlu0 %861 }
 0x1fa   : > { %1275 = vmatmul.mubr.msk.bf16.vlgmr.msra.gmra.mrb[8].mxu0 %vm532_vm2, %v642_v30  ;;  %v867_v35 = vsel %vm532_vm2, %v862_v34, 0  ;;  %v1408_v30 = vld [vmem:[%s2068_s6] sm:$0xff]  }
 0x1fb   : > { %1285 = vmatpush3.bf16.xpose.msra.mxu0 %v758_v32  ;;  %1286 = vmatprep.mubr.msk.bf16.mxu0 %vm1631_vm0, %v1630_v0 }
 0x1fc   : > { %1296 = vmatprep.subr.bf16.mxu0 %v1630_v0 }
 0x1fd   : > { %v593_v33 = vpop.permute.xlu1 %592 }
 0x1fe   : > { %1267 = vmatpush3.bf16.msra.mxu1 %v593_v33 }
 0x1ff   : > { %1278 = vmatprep.subr.bf16.mxu1 %v1630_v0 }
 0x202   : > { %1287 = vmatmul.mubr.msk.bf16.vlgmr.msra.gmra.mrb[12].mxu0 %vm532_vm2, %v751_v29 }
 0x203   : > { %1297 = vmatpush3.bf16.xpose.msra.mxu0 %v867_v35  ;;  %1298 = vmatprep.mubr.msk.bf16.mxu0 %vm1631_vm0, %v1630_v0 }
 0x204   : > { %1308 = vmatprep.subr.bf16.mxu0 %v1630_v0 }
 0x20a   : > { %1299 = vmatmul.mubr.msk.bf16.vlgmr.msra.gmra.mrb[16].mxu0 %vm532_vm2, %v860_v31 }
 0x20b   : > { %1312 = vmatprep.mubr.msk.bf16.mxu0 %vm1631_vm0, %v1630_v0  ;;  %1309 = vmatpush3.bf16.msra.mxu0 %v1408_v30 }
 0x20c   : > { %1310 = vmatprep.subr.bf16.mxu0 %v1630_v0 }
 0x25b   : > { %v573_v36 = vpop.f32.mrb[4].mxu0 }
 0x25c   : > { %v579_v37 = vmul.f32 0.35355338, %v573_v36  ;;  %v1264_v38 = vpop.f32.mrb[5].mxu0 }
 0x25d   : > { %v576_v39 = vpop.f32.mrb[6].mxu0  ;;  %v1409_v38 = vld [vmem:[%s2068_s6 + $0x8] sm:$0xff]  }
 0x25e   : > { %v1265_v40 = vpop.f32.mrb[7].mxu0  ;;  %v581_v41 = vsel %vm580_vm3, %v579_v37, -inf  ;;  %1311 = vmatpush3.bf16.msra.mxu0 %v1409_v38 }
 0x25f   : > { %582 = vmax.xlane.f32.xlu0 %v581_v41 }
 0x2cd   : > { %v685_v42 = vpop.f32.mrb[8].mxu0 }
 0x2ce   : > { %v691_v43 = vmul.f32 0.35355338, %v685_v42  ;;  %v1276_v44 = vpop.f32.mrb[9].mxu0 }
 0x2cf   : > { %v688_v45 = vpop.f32.mrb[10].mxu0 }
 0x2d0   : > { %v1277_v46 = vpop.f32.mrb[11].mxu0  ;;  %v692_v47 = vsel %vm580_vm3, %v691_v43, -inf }
 0x2d1   : > { %693 = vmax.xlane.f32.xlu1 %v692_v47 }
 0x2d5   : > { %v794_v48 = vpop.f32.mrb[12].mxu0 }
 0x2d6   : > { %v800_v49 = vmul.f32 0.35355338, %v794_v48  ;;  %v1288_v50 = vpop.f32.mrb[13].mxu0 }
 0x2d7   : > { %v797_v51 = vpop.f32.mrb[14].mxu0 }
 0x2d8   : > { %v1289_v52 = vpop.f32.mrb[15].mxu0  ;;  %v801_v53 = vsel %vm580_vm3, %v800_v49, -inf }
 0x2d9   : > { %802 = vmax.xlane.f32.xlu0 %v801_v53 }
 0x2dd   : > { %v903_v54 = vpop.f32.mrb[16].mxu0 }
 0x2de   : > { %v909_v55 = vmul.f32 0.35355338, %v903_v54  ;;  %v1300_v56 = vpop.f32.mrb[17].mxu0 }
 0x2df   : > { %v906_v57 = vpop.f32.mrb[18].mxu0 }
 0x2e0   : > { %v1301_v58 = vpop.f32.mrb[19].mxu0  ;;  %v910_v59 = vsel %vm580_vm3, %v909_v55, -inf }
 0x2e1   : > { %911 = vmax.xlane.f32.xlu0 %v910_v59 }
 0x2e2   : > { %811 = vrot.lane.b32.xlu1 %v1947_v22, %s1636_s4 }
 0x2e6   : > { %920 = vrot.lane.b32.xlu1 %v1947_v22, %s1637_s26 }
 0x2ec   : > { %v583_v60 = vpop.xlane.xlu0 %582 }
 0x2ed   : > { %v584_v61 = vsub.f32 %v579_v37, %v583_v60  ;;  %v1210_v60 = vld [vmem:[%s2069_s7] ss:$0 sm:$0xff] }
 0x2ef   : > { %v585_v62 = vmul.f32 1.442695, %v584_v61 }
 0x2f1   : > { %1410 = vpow2.f32 %v585_v62 }
 0x2f7   : > { %702 = vrot.lane.b32.xlu0 %v1947_v22, %s1638_s17  ;;  %s2017_s17 = scalar_lea.hbm %s2070_s8, %s1215_s18 }
 0x2fb   : > { %v1411_v63 = vpop.eup %1410 }
 0x2fc   : > { %v590_v1 = vpack.c.bf16 %v1411_v63, %v1411_v63  ;;  %v587_v22 = vsel %vm580_vm3, %v1411_v63, 0.0 }
 0x2fe   : > { %1269 = vmatmul.mubr.msk.bf16.vlgmr.msra.gmra.mrb[4].mxu1 %vm580_vm3, %v590_v1 }
 0x2ff   : > { %1280 = vmatprep.mubr.msk.bf16.mxu1 %vm1631_vm0, %v1630_v0 }
 0x35e   : > { %v694_v2 = vpop.xlane.xlu1 %693 }
 0x35f   : > { %v695_v3 = vsub.f32 %v691_v43, %v694_v2 }
 0x361   : > { %v696_v4 = vmul.f32 1.442695, %v695_v3 }
 0x362   : > { %v812_v16 = vpop.permute.xlu1 %811 }
 0x363   : > { %1412 = vpow2.f32 %v696_v4 }
 0x366   : > { %v803_v5 = vpop.xlane.xlu0 %802  ;;  %v921_v20 = vpop.permute.xlu1 %920 }
 0x367   : > { %v804_v6 = vsub.f32 %v800_v49, %v803_v5 }
 0x369   : > { %v805_v7 = vmul.f32 1.442695, %v804_v6 }
 0x36b   : > { %1414 = vpow2.f32 %v805_v7 }
 0x36d   : > { %v1413_v8 = vpop.eup %1412 }
 0x36e   : > { %v912_v9 = vpop.xlane.xlu0 %911  ;;  %v698_v10 = vsel %vm580_vm3, %v1413_v8, 0.0  ;;  %v701_v14 = vpack.c.bf16 %v1413_v8, %v1413_v8 }
 0x36f   : > { %v913_v11 = vsub.f32 %v909_v55, %v912_v9  ;;  %699 = vadd.xlane.f32.xlu0 %v698_v10 }
 0x371   : > { %v914_v12 = vmul.f32 1.442695, %v913_v11 }
 0x372   : > { %v703_v13 = vpop.permute.xlu0 %702 }
 0x373   : > { %1416 = vpow2.f32 %v914_v12  ;;  %1279 = vmatpush3.bf16.msra.mxu1 %v703_v13 }
 0x374   : > { %1290 = vmatprep.subr.bf16.mxu1 %v1630_v0 }
 0x375   : > { %v1415_v15 = vpop.eup %1414 }
 0x376   : > { %1281 = vmatmul.mubr.msk.bf16.vlgmr.msra.gmra.mrb[8].mxu1 %vm580_vm3, %v701_v14  ;;  %v807_v17 = vsel %vm580_vm3, %v1415_v15, 0.0  ;;  %v810_v18 = vpack.c.bf16 %v1415_v15, %v1415_v15 }
 0x377   : > { %808 = vadd.xlane.f32.xlu1 %v807_v17  ;;  %1291 = vmatpush3.bf16.msra.mxu1 %v812_v16 }
 0x378   : > { %1292 = vmatprep.mubr.msk.bf16.mxu1 %vm1631_vm0, %v1630_v0  ;;  %1302 = vmatprep.subr.bf16.mxu1 %v1630_v0 }
 0x37d   : > { %v1417_v19 = vpop.eup %1416 }
 0x37e   : > { %1293 = vmatmul.mubr.msk.bf16.vlgmr.msra.gmra.mrb[12].mxu1 %vm580_vm3, %v810_v18  ;;  %v916_v21 = vsel %vm580_vm3, %v1417_v19, 0.0  ;;  %v919_v23 = vpack.c.bf16 %v1417_v19, %v1417_v19 }
 0x37f   : > { %1303 = vmatpush3.bf16.msra.mxu1 %v921_v20  ;;  %917 = vadd.xlane.f32.xlu0 %v916_v21 }
 0x380   : > { %1304 = vmatprep.mubr.msk.bf16.mxu1 %vm1631_vm0, %v1630_v0 }
 0x383   : > { %588 = vadd.xlane.f32.xlu0 %v587_v22 }
 0x386   : > { %1305 = vmatmul.mubr.msk.bf16.vlgmr.msra.gmra.mrb[16].mxu1 %vm580_vm3, %v919_v23 }
 0x3d1   : > { %v632_v24 = vpop.f32.mrb[4].mxu1 }
 0x3d2   : > { %v1270_v25 = vpop.f32.mrb[5].mxu1 }
 0x3d3   : > { %v635_v26 = vpop.f32.mrb[6].mxu1 }
 0x3d4   : > { %v1271_v27 = vpop.f32.mrb[7].mxu1 }
 0x3fc   : > { %v700_v28 = vpop.xlane.xlu0 %699 }
 0x3fd   : > { %1418 = vrcp.f32 %v700_v28 }
 0x404   : > { %v809_v29 = vpop.xlane.xlu1 %808 }
 0x405   : > { %1420 = vrcp.f32 %v809_v29 }
 0x407   : > { %v1419_v31 = vpop.eup %1418 }
 0x40c   : > { %v918_v36 = vpop.xlane.xlu0 %917 }
 0x40d   : > { %1422 = vrcp.f32 %v918_v36 }
 0x40f   : > { %v1421_v39 = vpop.eup %1420 }
 0x410   : > { %v589_v50 = vpop.xlane.xlu0 %588 }
 0x411   : > { %1424 = vrcp.f32 %v589_v50 }
 0x417   : > { %v1423_v0 = vpop.eup %1422 }
 0x41b   : > { %v1425_v51 = vpop.eup %1424 }
 0x41c   : > { %v639_v53 = vmul.f32 %v1425_v51, %v632_v24 }
 0x449   : > { %v742_v32 = vpop.f32.mrb[8].mxu1 }
 0x44a   : > { %v749_v33 = vmul.f32 %v1419_v31, %v742_v32  ;;  %v1282_v34 = vpop.f32.mrb[9].mxu1 }
 0x44b   : > { %v745_v35 = vpop.f32.mrb[10].mxu1 }
 0x44c   : > { %v1283_v37 = vpop.f32.mrb[11].mxu1  ;;  %969 = vrot.lane.b32.xlu1 %v749_v33, %s1639_s19  ;;  %s1548_s19 = scalar_lea.vmem %s1547_s13, 256 }
 0x44d   : > { %p1550_p5 = scmp.lt.s32.totalorder %s1548_s19, %s1542_s24 }
 0x44f   : > { %p1551_p3 = por %p1550_p5, %p1549_p4 }
 0x451   : > { %v851_v40 = vpop.f32.mrb[12].mxu1  ;;  %p1552_p7 = pnand %p1551_p3, %p1545_p10 }
 0x452   : > { %v858_v41 = vmul.f32 %v1421_v39, %v851_v40  ;;  %v1294_v42 = vpop.f32.mrb[13].mxu1 }
 0x453   : > { %v854_v43 = vpop.f32.mrb[14].mxu1 }
 0x454   : > { %973 = vrot.lane.b32.xlu0 %v858_v41, %s1640_s10  ;;  %v1295_v44 = vpop.f32.mrb[15].mxu1 }
 0x459   : > { %v960_v45 = vpop.f32.mrb[16].mxu1 }
 0x45a   : > { %v967_v46 = vmul.f32 %v1423_v0, %v960_v45  ;;  %v1306_v47 = vpop.f32.mrb[17].mxu1 }
 0x45b   : > { %v963_v48 = vpop.f32.mrb[18].mxu1 }
 0x45c   : > { %v1307_v49 = vpop.f32.mrb[19].mxu1  ;;  %977 = vrot.lane.b32.xlu1 %v967_v46, %s1641_s16 }
 0x4be   : > { %v970_v52 = vpop.permute.xlu1 %969 }
 0x4bf   : > { %v980_v55 = vsel %vm532_vm2, %v639_v53, %v970_v52 }
 0x4c6   : > { %v974_v54 = vpop.permute.xlu0 %973 }
 0x4c7   : > { %v981_v56 = vsel %vm580_vm3, %v980_v55, %v974_v54 }
 0x4ce   : > { %v978_v57 = vpop.permute.xlu1 %977 }
 0x4cf   : > { %v983_v58 = vsel %vm982_vm4, %v981_v56, %v978_v57 }
 0x4d0   : > { %v984_v59 = vpack.c.bf16 %v983_v58, %v983_v58 }
 0x4d2   : > { %1313 = vmatmul.mubr.msk.bf16.vlgmr.msra.gmra.mrb[20].mxu0 %vm419_vm1, %v984_v59 }
 0x5a5   : > { %v1045_v61 = vpop.f32.mrb[20].mxu0 }
 0x5a6   : > { %v1046_v62 = vadd.f32 %v1210_v60, %v1045_v61  ;;  %v1314_v63 = vpop.f32.mrb[21].mxu0 }
 0x5a7   : > { %v1048_v1 = vpop.f32.mrb[22].mxu0 }
 0x5a8   : > { %v1315_v2 = vpop.f32.mrb[23].mxu0  ;;  %1051 = vst.msk [vmem:[%s389_s21] sm:$0xff] %vm419_vm1, %v1046_v62 }
 0x5a9   : > { %1555 = shalt.err (!%p1552_p7)
}
 0x5aa   : > { %s1556_s2 = scalar_lea.hbm %s2017_s17, 128  ;;  %s1560_s10 = scalar_lea.hbm %s2070_s8, 256 }
 0x5ab   : > { %p1557_p9 = scmp.ne.s32.totalorder %s2017_s17, %s1556_s2  ;;  %p1561_p11 = scmp.lt.u32.totalorder %s2017_s17, %s2070_s8 }
 0x5ac   : > { %p1562_p1 = scmp.lt.u32.totalorder %s1560_s10, %s1556_s2  ;;  %p1564_p2 = scmp.lt.u32.totalorder %s1556_s2, %s2017_s17 }
 0x5ad   : > { %p1558_p0 = pnand %p1557_p9, %p2094_p13 }
 0x5ae   : > { %p1563_p12 = por %p1562_p1, %p1561_p11 }
 0x5af   : > { %p1559_p8 = pneg %p1558_p0 }
 0x5b0   : > { %p1565_p6 = por %p1564_p2, %p1563_p12 }
 0x5b2   : > { %p1566_p10 = pnand %p1565_p6, %p1559_p8 }
 0x5b4   : > { %1569 = shalt.err (!%p1566_p10)
}
 0x5b5   : > { %1328 = dma.vmem_to_hbm [thread:$0]  (%p2094_p13), %s2019_s23, 128, %s2017_s17, %s1053_s9  }
 0x5b6 PF: > { %s1078_s15 = sand.u32 1, %s1608_s27   ;;  %p2095_p4 = scmp.ne.s32.totalorder %s2078_s12, 0 }
 0x5b7   : > { %p2096_p5 = scmp.ge.s32.totalorder %s1620_s30, 2  ;;  %s1079_s18 = scalar_lea.sflag [#allocation4], %s1078_s15 }
 0x5b9   : > { %p1345_p3 = pnand %p2096_p5, %p2095_p4 }
 0x5bb   : > { %1603 = dma.done.wait (!%p1345_p3), %s1079_s18, 128  }
 0x5bc   : > { %1605 = vsyncadd (!%p1345_p3), %s1079_s18, 4294967168  ;;  %s2097_s21 = sld [smem:[#allocation16_spill]]  ;;  %p25_p7 = scmp.ge.s32.totalorder %s1798_s20, 4  }
 0x5bd   : > { %s2098_s27 = smov %s1612_s28  ;;  %s2099_s28 = smov %s1616_s29 }
 0x5be   : > { %s2101_s30 = smov %s1798_s20  ;;  %27 = sbr.rel (!%p25_p7) target bundleno = 12 (0xc), region = 118 }
 0x5c2   : > { %s2100_s29 = smov %s2097_s21 }
 0x5c5   :  { %1084 = vsyncpa [#allocation3], 1 }
 0x5c6   :  { %1086 = vsyncpa [#allocation3 + $0x1], 1 }
 0x5c7   :  { %1087 = vsyncpa [#allocation6], 1 }
 0x5c8   :  { %1089 = vsyncpa [#allocation6 + $0x1], 1 }
 0x5c9   :  { %1090 = vsyncpa [#allocation9], 1 }
 0x5ca   :  { %1091 = vsyncpa [#allocation4], 1 }
 0x5cb   :  { %1093 = vsyncpa [#allocation4 + $0x1], 1 }

</bundles_post_ra>
